<compile_context>
chip_gen: v6e
topology: v6e:2x2x1
jax: 0.10.0
libtpu: 0.0.40
codegen_flags: <defaults>
</compile_context>

<pallas_src>
import functools

import jax
import jax.numpy as jnp
from jax.experimental import pallas as pl
from jax.experimental.pallas import tpu as pltpu


def fused_denoiser_kernel(x_ref, cond_ref, time_ref,
                          w1_ref, b1_ref, w2_ref, b2_ref,
                          out_ref, acc_ref, ct_ref, *, matmul_dtype):
    """Grid = (B, L). One grid step = one Denoiser block applied to one batch row.

    x_ref:    [S, D]   (this batch row's sequence; batch dim squeezed)
    cond_ref: [1, D]   time_ref: [1, D]
    w1_ref:   [D, H]   (encoder weight, pre-transposed)   b1_ref: [1, H]
    w2_ref:   [H, D]   (decoder weight, pre-transposed)   b2_ref: [1, D]
    out_ref:  [S, D]
    acc_ref:  VMEM [S, D] f32 — running activation, resident across the L axis
    ct_ref:   VMEM [1, D] f32 — 0.2*(cond*time), computed once per batch row
    """
    l = pl.program_id(1)

    @pl.when(l == 0)
    def _init():
        ct_ref[...] = 0.2 * (cond_ref[...] * time_ref[...])
        acc_ref[...] = x_ref[...].astype(jnp.float32)

    # h = 0.2*(cond*time) + 0.8*x_prev   ([1,D] broadcasts over the S sublanes; f32 VPU)
    h = ct_ref[...] + 0.8 * acc_ref[...]                                 # [S, D]

    # encoder: Linear(D -> H) + ReLU — single 2-D MXU matmul, f32 accumulation.
    z1 = jnp.dot(h.astype(matmul_dtype), w1_ref[...].astype(matmul_dtype),
                 preferred_element_type=jnp.float32)
    z1 = jnp.maximum(z1 + b1_ref[...], 0.0)                              # [S, H]

    # decoder: Linear(H -> D) + Sigmoid.
    z2 = jnp.dot(z1.astype(matmul_dtype), w2_ref[...].astype(matmul_dtype),
                 preferred_element_type=jnp.float32)
    acc_ref[...] = jax.nn.sigmoid(z2 + b2_ref[...])                      # [S, D]

    @pl.when(l == pl.num_programs(1) - 1)
    def _finalize():
        out_ref[...] = acc_ref[...].astype(out_ref.dtype)


@functools.partial(jax.jit, static_argnames=("matmul_dtype",))
def conditional_entity_denoiser(params, x, condition, time_embedding,
                                matmul_dtype=jnp.float32):
    """Mirrors: `for block in self.blocks: x = block(x, condition, time_embedding)`.

    NOTE: the PyTorch forward has no return statement (returns None); we return the
    final activation so the result is observable. Submodules unused by forward
    (per-block layer_norm1, top-level layer_norm / linear) are omitted.
    """
    B, S, D = x.shape
    w1, b1, w2, b2 = params["w1"], params["b1"], params["w2"], params["b2"]
    L, _, H = w1.shape

    # Leading-batch 3-D layout so the per-batch block is (None, 1, D)
    # (last two block dims equal the full array dims -> no tiling constraint issues).
    cond3 = condition.reshape(B, 1, D)
    time3 = time_embedding.reshape(B, 1, D)

    kernel = functools.partial(fused_denoiser_kernel, matmul_dtype=matmul_dtype)

    # TODO(synk): for production-sized S on v7x (64 MiB VMEM), tile S with an extra
    # "parallel" grid axis and set pltpu.CompilerParams(vmem_limit_bytes=...).
    return pl.pallas_call(
        kernel,
        out_shape=jax.ShapeDtypeStruct((B, S, D), x.dtype),
        grid_spec=pltpu.PrefetchScalarGridSpec(
            num_scalar_prefetch=0,
            grid=(B, L),                       # batch (parallel) x blocks (carried)
            in_specs=[
                pl.BlockSpec((None, S, D), lambda b, l: (b, 0, 0)),   # x (per batch)
                pl.BlockSpec((None, 1, D), lambda b, l: (b, 0, 0)),   # condition
                pl.BlockSpec((None, 1, D), lambda b, l: (b, 0, 0)),   # time embedding
                pl.BlockSpec((None, D, H), lambda b, l: (l, 0, 0)),   # W1^T per block
                pl.BlockSpec((None, 1, H), lambda b, l: (l, 0, 0)),   # b1 per block
                pl.BlockSpec((None, H, D), lambda b, l: (l, 0, 0)),   # W2^T per block
                pl.BlockSpec((None, 1, D), lambda b, l: (l, 0, 0)),   # b2 per block
            ],
            out_specs=pl.BlockSpec((None, S, D), lambda b, l: (b, 0, 0)),
            scratch_shapes=[
                pltpu.VMEM((S, D), jnp.float32),   # running activation (VMEM-resident)
                pltpu.VMEM((1, D), jnp.float32),   # 0.2 * (cond * time), once per batch
            ],
        ),
        compiler_params=pltpu.CompilerParams(
            dimension_semantics=("parallel", "arbitrary"),
        ),
    )(x, cond3, time3, w1, b1, w2, b2)


def init_params(key, d_model, num_blocks):
    """PyTorch-Linear-style uniform init; weights stacked over blocks and pre-transposed."""
    D = d_model
    H = d_model // 2
    w1s, b1s, w2s, b2s = [], [], [], []
    for i in range(num_blocks):
        k = jax.random.fold_in(key, i)
        k1, k2, k3, k4 = jax.random.split(k, 4)
        lim1 = 1.0 / jnp.sqrt(jnp.float32(D))
        lim2 = 1.0 / jnp.sqrt(jnp.float32(H))
        w1 = jax.random.uniform(k1, (H, D), jnp.float32, -lim1, lim1)   # torch [out, in]
        b1 = jax.random.uniform(k2, (H,), jnp.float32, -lim1, lim1)
        w2 = jax.random.uniform(k3, (D, H), jnp.float32, -lim2, lim2)
        b2 = jax.random.uniform(k4, (D,), jnp.float32, -lim2, lim2)
        w1s.append(w1.T)                  # [D, H]
        b1s.append(b1.reshape(1, H))
        w2s.append(w2.T)                  # [H, D]
        b2s.append(b2.reshape(1, D))
    return {
        "w1": jnp.stack(w1s),             # [L, D, H]
        "b1": jnp.stack(b1s),             # [L, 1, H]
        "w2": jnp.stack(w2s),             # [L, H, D]
        "b2": jnp.stack(b2s),             # [L, 1, D]
    }


if __name__ == "__main__":
    d_model, num_blocks = 32, 3
    B, S = 2, 8

    key = jax.random.PRNGKey(0)
    kx, kc, kt, kp = jax.random.split(key, 4)
    x = jax.random.normal(kx, (B, S, d_model), jnp.float32)
    condition = jax.random.normal(kc, (B, d_model), jnp.float32)
    time_embedding = jax.random.normal(kt, (B, d_model), jnp.float32)
    params = init_params(kp, d_model, num_blocks)

    out = conditional_entity_denoiser(params, x, condition, time_embedding)
    out = jax.block_until_ready(out)

    # Pure-JAX reference.
    ref = x
    for i in range(num_blocks):
        ct = condition * time_embedding
        h = 0.2 * ct[:, None, :] + 0.8 * ref
        z1 = jnp.maximum(jnp.einsum('bsd,dh->bsh', h, params["w1"][i]) + params["b1"][i, 0], 0.0)
        ref = jax.nn.sigmoid(jnp.einsum('bsh,hd->bsd', z1, params["w2"][i]) + params["b2"][i, 0])

    assert out.shape == (B, S, d_model) and out.dtype == jnp.float32
    assert jnp.allclose(out, ref, atol=1e-5, rtol=1e-5), "f32 Pallas kernel mismatch vs reference"

    # bf16-matmul variant (v6e/v7x MXU fast path): bf16 matmul inputs, f32 accumulate,
    # all elementwise math stays f32.
    out_bf16 = jax.block_until_ready(
        conditional_entity_denoiser(params, x, condition, time_embedding,
                                    matmul_dtype=jnp.bfloat16))
    assert jnp.allclose(out_bf16, ref, atol=5e-2), "bf16-matmul Pallas kernel mismatch vs reference"

    print("KERNEL_OK")
</pallas_src>

<mosaic_0001>
module attributes {stable_mosaic.version = 11 : i64} {
  func.func @fused_denoiser_kernel(%arg0: i32, %arg1: i32, %arg2: memref<1x8x32xf32, #tpu.memory_space<vmem>>, %arg3: memref<1x1x32xf32, #tpu.memory_space<vmem>>, %arg4: memref<1x1x32xf32, #tpu.memory_space<vmem>>, %arg5: memref<1x32x16xf32, #tpu.memory_space<vmem>>, %arg6: memref<1x1x16xf32, #tpu.memory_space<vmem>>, %arg7: memref<1x16x32xf32, #tpu.memory_space<vmem>>, %arg8: memref<1x1x32xf32, #tpu.memory_space<vmem>>, %arg9: memref<1x8x32xf32, #tpu.memory_space<vmem>>, %arg10: memref<8x32xf32, #tpu.memory_space<vmem>>, %arg11: memref<1x32xf32, #tpu.memory_space<vmem>>) attributes {dimension_semantics = [#tpu.dimension_semantics<parallel>, #tpu.dimension_semantics<arbitrary>], iteration_bounds = array<i64: 2, 3>, scalar_prefetch = 0 : i64, scratch_operands = 2 : i64, tpu.core_type = #tpu.core_type<tc>, window_params = [{transform_indices = @transform_0, window_bounds = array<i64: 1, 8, 32>}, {transform_indices = @transform_1, window_bounds = array<i64: 1, 1, 32>}, {transform_indices = @transform_2, window_bounds = array<i64: 1, 1, 32>}, {transform_indices = @transform_3, window_bounds = array<i64: 1, 32, 16>}, {transform_indices = @transform_4, window_bounds = array<i64: 1, 1, 16>}, {transform_indices = @transform_5, window_bounds = array<i64: 1, 16, 32>}, {transform_indices = @transform_6, window_bounds = array<i64: 1, 1, 32>}, {transform_indices = @transform_7, window_bounds = array<i64: 1, 8, 32>}]} {
    %c0_i32 = arith.constant 0 : i32
    %0 = arith.cmpi eq, %arg1, %c0_i32 : i32
    %1 = arith.extui %0 : i1 to i32
    %c0_i32_0 = arith.constant 0 : i32
    %2 = arith.cmpi ne, %1, %c0_i32_0 : i32
    scf.if %2 {
      %c0_23 = arith.constant 0 : index
      %c0_24 = arith.constant 0 : index
      %c0_25 = arith.constant 0 : index
      %34 = vector.load %arg3[%c0_23, %c0_24, %c0_25] : memref<1x1x32xf32, #tpu.memory_space<vmem>>, vector<1x1x32xf32>
      %35 = vector.shape_cast %34 : vector<1x1x32xf32> to vector<1x32xf32>
      %c0_26 = arith.constant 0 : index
      %c0_27 = arith.constant 0 : index
      %c0_28 = arith.constant 0 : index
      %36 = vector.load %arg4[%c0_26, %c0_27, %c0_28] : memref<1x1x32xf32, #tpu.memory_space<vmem>>, vector<1x1x32xf32>
      %37 = vector.shape_cast %36 : vector<1x1x32xf32> to vector<1x32xf32>
      %38 = arith.mulf %35, %37 : vector<1x32xf32>
      %cst_29 = arith.constant 2.000000e-01 : f32
      %39 = vector.broadcast %cst_29 : f32 to vector<1x32xf32>
      %40 = arith.mulf %39, %38 : vector<1x32xf32>
      %c0_30 = arith.constant 0 : index
      %c0_31 = arith.constant 0 : index
      %41 = vector.load %arg11[%c0_30, %c0_31] : memref<1x32xf32, #tpu.memory_space<vmem>>, vector<1x32xf32>
      tpu.vector_store %arg11[%c0_30, %c0_31], %40 {strides = array<i32>} : memref<1x32xf32, #tpu.memory_space<vmem>>, vector<1x32xf32>,
      %c0_32 = arith.constant 0 : index
      %c0_33 = arith.constant 0 : index
      %c0_34 = arith.constant 0 : index
      %42 = vector.load %arg2[%c0_32, %c0_33, %c0_34] : memref<1x8x32xf32, #tpu.memory_space<vmem>>, vector<1x8x32xf32>
      %43 = vector.shape_cast %42 : vector<1x8x32xf32> to vector<8x32xf32>
      %c0_35 = arith.constant 0 : index
      %c0_36 = arith.constant 0 : index
      %44 = vector.load %arg10[%c0_35, %c0_36] : memref<8x32xf32, #tpu.memory_space<vmem>>, vector<8x32xf32>
      tpu.vector_store %arg10[%c0_35, %c0_36], %43 {strides = array<i32>} : memref<8x32xf32, #tpu.memory_space<vmem>>, vector<8x32xf32>,
    } else {
    }
    %c0 = arith.constant 0 : index
    %c0_1 = arith.constant 0 : index
    %3 = vector.load %arg11[%c0, %c0_1] : memref<1x32xf32, #tpu.memory_space<vmem>>, vector<1x32xf32>
    %c0_2 = arith.constant 0 : index
    %c0_3 = arith.constant 0 : index
    %4 = vector.load %arg10[%c0_2, %c0_3] : memref<8x32xf32, #tpu.memory_space<vmem>>, vector<8x32xf32>
    %cst = arith.constant 8.000000e-01 : f32
    %5 = vector.broadcast %cst : f32 to vector<8x32xf32>
    %6 = arith.mulf %5, %4 : vector<8x32xf32>
    %7 = vector.broadcast %3 : vector<1x32xf32> to vector<8x32xf32>
    %8 = arith.addf %7, %6 : vector<8x32xf32>
    %c0_4 = arith.constant 0 : index
    %c0_5 = arith.constant 0 : index
    %c0_6 = arith.constant 0 : index
    %9 = vector.load %arg5[%c0_4, %c0_5, %c0_6] : memref<1x32x16xf32, #tpu.memory_space<vmem>>, vector<1x32x16xf32>
    %10 = vector.shape_cast %9 : vector<1x32x16xf32> to vector<32x16xf32>
    %cst_7 = arith.constant dense<0.000000e+00> : vector<8x16xf32>
    %11 = tpu.matmul %8, %10, %cst_7 {dimension_numbers = #tpu.dot_dimension_numbers<[1], [0], [0], [1], [0, 0, 1, 1], [], []>} : vector<8x32xf32>, vector<32x16xf32>, vector<8x16xf32> -> vector<8x16xf32>
    %c0_8 = arith.constant 0 : index
    %c0_9 = arith.constant 0 : index
    %c0_10 = arith.constant 0 : index
    %12 = vector.load %arg6[%c0_8, %c0_9, %c0_10] : memref<1x1x16xf32, #tpu.memory_space<vmem>>, vector<1x1x16xf32>
    %13 = vector.shape_cast %12 : vector<1x1x16xf32> to vector<1x16xf32>
    %14 = vector.broadcast %13 : vector<1x16xf32> to vector<8x16xf32>
    %15 = arith.addf %11, %14 : vector<8x16xf32>
    %cst_11 = arith.constant 0.000000e+00 : f32
    %16 = vector.broadcast %cst_11 : f32 to vector<8x16xf32>
    %17 = arith.maximumf %15, %16 : vector<8x16xf32>
    %c0_12 = arith.constant 0 : index
    %c0_13 = arith.constant 0 : index
    %c0_14 = arith.constant 0 : index
    %18 = vector.load %arg7[%c0_12, %c0_13, %c0_14] : memref<1x16x32xf32, #tpu.memory_space<vmem>>, vector<1x16x32xf32>
    %19 = vector.shape_cast %18 : vector<1x16x32xf32> to vector<16x32xf32>
    %cst_15 = arith.constant dense<0.000000e+00> : vector<8x32xf32>
    %20 = tpu.matmul %17, %19, %cst_15 {dimension_numbers = #tpu.dot_dimension_numbers<[1], [0], [0], [1], [0, 0, 1, 1], [], []>} : vector<8x16xf32>, vector<16x32xf32>, vector<8x32xf32> -> vector<8x32xf32>
    %c0_16 = arith.constant 0 : index
    %c0_17 = arith.constant 0 : index
    %c0_18 = arith.constant 0 : index
    %21 = vector.load %arg8[%c0_16, %c0_17, %c0_18] : memref<1x1x32xf32, #tpu.memory_space<vmem>>, vector<1x1x32xf32>
    %22 = vector.shape_cast %21 : vector<1x1x32xf32> to vector<1x32xf32>
    %23 = vector.broadcast %22 : vector<1x32xf32> to vector<8x32xf32>
    %24 = arith.addf %20, %23 : vector<8x32xf32>
    %25 = arith.negf %24 : vector<8x32xf32>
    %26 = math.exp %25 : vector<8x32xf32>
    %cst_19 = arith.constant 1.000000e+00 : f32
    %27 = vector.broadcast %cst_19 : f32 to vector<8x32xf32>
    %28 = arith.addf %27, %26 : vector<8x32xf32>
    %29 = arith.divf %27, %28 : vector<8x32xf32>
    %c0_20 = arith.constant 0 : index
    %c0_21 = arith.constant 0 : index
    %30 = vector.load %arg10[%c0_20, %c0_21] : memref<8x32xf32, #tpu.memory_space<vmem>>, vector<8x32xf32>
    tpu.vector_store %arg10[%c0_20, %c0_21], %29 {strides = array<i32>} : memref<8x32xf32, #tpu.memory_space<vmem>>, vector<8x32xf32>,
    %c2_i32 = arith.constant 2 : i32
    %31 = arith.cmpi eq, %arg1, %c2_i32 : i32
    %32 = arith.extui %31 : i1 to i32
    %c0_i32_22 = arith.constant 0 : i32
    %33 = arith.cmpi ne, %32, %c0_i32_22 : i32
    scf.if %33 {
      %c0_23 = arith.constant 0 : index
      %c0_24 = arith.constant 0 : index
      %34 = vector.load %arg10[%c0_23, %c0_24] : memref<8x32xf32, #tpu.memory_space<vmem>>, vector<8x32xf32>
      %c0_25 = arith.constant 0 : index
      %c0_26 = arith.constant 0 : index
      %c0_27 = arith.constant 0 : index
      %35 = vector.load %arg9[%c0_25, %c0_26, %c0_27] : memref<1x8x32xf32, #tpu.memory_space<vmem>>, vector<1x8x32xf32>
      %36 = vector.shape_cast %35 : vector<1x8x32xf32> to vector<8x32xf32>
      %37 = vector.shape_cast %34 : vector<8x32xf32> to vector<1x8x32xf32>
      tpu.vector_store %arg9[%c0_25, %c0_26, %c0_27], %37 {strides = array<i32>} : memref<1x8x32xf32, #tpu.memory_space<vmem>>, vector<1x8x32xf32>,
    } else {
    }
    return
  }
  func.func @transform_0(%arg0: i32, %arg1: i32) -> (i32, i32, i32) {
    %c0_i32 = arith.constant 0 : i32
    %c0_i32_0 = arith.constant 0 : i32
    %c0_i32_1 = arith.constant 0 : i32
    return %arg0, %c0_i32, %c0_i32_0 : i32, i32, i32
  }
  func.func @transform_1(%arg0: i32, %arg1: i32) -> (i32, i32, i32) {
    %c0_i32 = arith.constant 0 : i32
    %c0_i32_0 = arith.constant 0 : i32
    %c0_i32_1 = arith.constant 0 : i32
    return %arg0, %c0_i32, %c0_i32_0 : i32, i32, i32
  }
  func.func @transform_2(%arg0: i32, %arg1: i32) -> (i32, i32, i32) {
    %c0_i32 = arith.constant 0 : i32
    %c0_i32_0 = arith.constant 0 : i32
    %c0_i32_1 = arith.constant 0 : i32
    return %arg0, %c0_i32, %c0_i32_0 : i32, i32, i32
  }
  func.func @transform_3(%arg0: i32, %arg1: i32) -> (i32, i32, i32) {
    %c0_i32 = arith.constant 0 : i32
    %c0_i32_0 = arith.constant 0 : i32
    %c0_i32_1 = arith.constant 0 : i32
    return %arg1, %c0_i32, %c0_i32_0 : i32, i32, i32
  }
  func.func @transform_4(%arg0: i32, %arg1: i32) -> (i32, i32, i32) {
    %c0_i32 = arith.constant 0 : i32
    %c0_i32_0 = arith.constant 0 : i32
    %c0_i32_1 = arith.constant 0 : i32
    return %arg1, %c0_i32, %c0_i32_0 : i32, i32, i32
  }
  func.func @transform_5(%arg0: i32, %arg1: i32) -> (i32, i32, i32) {
    %c0_i32 = arith.constant 0 : i32
    %c0_i32_0 = arith.constant 0 : i32
    %c0_i32_1 = arith.constant 0 : i32
    return %arg1, %c0_i32, %c0_i32_0 : i32, i32, i32
  }
  func.func @transform_6(%arg0: i32, %arg1: i32) -> (i32, i32, i32) {
    %c0_i32 = arith.constant 0 : i32
    %c0_i32_0 = arith.constant 0 : i32
    %c0_i32_1 = arith.constant 0 : i32
    return %arg1, %c0_i32, %c0_i32_0 : i32, i32, i32
  }
  func.func @transform_7(%arg0: i32, %arg1: i32) -> (i32, i32, i32) {
    %c0_i32 = arith.constant 0 : i32
    %c0_i32_0 = arith.constant 0 : i32
    %c0_i32_1 = arith.constant 0 : i32
    return %arg0, %c0_i32, %c0_i32_0 : i32, i32, i32
  }
}

</mosaic_0001>

<bundles_post_ra>
// kernel: conditional_entity_denoiser.1
= control target key start
LH: loop header
LB: loop body
LE: loop exit
PB: predicated region body
PF: predicated region fallthrough
CT: control target
= control target key end

     0   :  { %s1177_s0 = inlined_call_operand.vmem [shape: f32[2,8,32], index: 0, kind: input, shape index: {}]   ;;  %s1178_s1 = inlined_call_operand.vmem [shape: f32[2,1,32], index: 1, kind: input, shape index: {}]   ;;  %s1179_s2 = inlined_call_operand.vmem [shape: f32[2,1,32], index: 2, kind: input, shape index: {}]   ;;  %s1180_s3 = inlined_call_operand.vmem [shape: f32[3,32,16], index: 3, kind: input, shape index: {}]   ;;  %s1181_s4 = inlined_call_operand.vmem [shape: f32[3,1,16], index: 4, kind: input, shape index: {}]   ;;  %s1182_s5 = inlined_call_operand.vmem [shape: f32[3,16,32], index: 5, kind: input, shape index: {}]   ;;  %s1183_s6 = inlined_call_operand.vmem [shape: f32[3,1,32], index: 6, kind: input, shape index: {}]   ;;  %s1184_s7 = inlined_call_operand.hbm [shape: f32[2,8,32], index: 7, kind: output, shape index: {}]  }
   0x1   :  { %1195 = sst [smem:[#allocation16_spill]] %s1178_s1 }
   0x2   :  { %1196 = sst [smem:[#allocation17_spill]] %s1184_s7 }
   0x3   :  { %12 = vsyncpa [#allocation5], 0 }
   0x4   :  { %14 = vsyncpa [#allocation5 + $0x1], 0  ;;  %s996_s24 = smov 0   ;;  %s998_s25 = smov 0  }
   0x5   :  { %s1000_s26 = smov 0   ;;  %s1002_s27 = smov 0  }
   0x6   :  { %s1004_s28 = smov 0   ;;  %s1006_s29 = smov 0  }
   0x7   :  { %s1008_s30 = smov 0   ;;  %s1010_s8 = smov 0  }
   0x8 LB: > { %1197 = sst [smem:[#allocation7_spill]] %s923_s24  ;;  %s731_s9 = sadd.s32 4294967295, %s951_s8   ;;  %s951_s8 = sphi %s1010_s8, %s20_s8   ;;  %s947_s30 = sphi %s1008_s30, %s1219_s30   ;;  %s943_s29 = sphi %s1006_s29, %s1222_s29   ;;  %s939_s28 = sphi %s1004_s28, %s1217_s28   ;;  %s935_s27 = sphi %s1002_s27, %s1216_s27   ;;  %s931_s26 = sphi %s1000_s26, %s1215_s26   ;;  %s927_s25 = sphi %s998_s25, %s1221_s25   ;;  %s923_s24 = sphi %s996_s24, %s1220_s24  }
   0x9   : > { %1198 = sst [smem:[#allocation8_spill]] %s931_s26  ;;  %s732_s10 = sadd.s32 4294967294, %s951_s8  }
   0xa   : > { %1199 = sst [smem:[#allocation9_spill]] %s943_s29  ;;  %s29_s11 = sadd.s32 1, %s943_s29 }
   0xb   : > { %1200 = sst [smem:[#allocation10_spill]] %s947_s30  ;;  %p30_p0 = scmp.ge.s32.totalorder %s29_s11, 3 }
   0xc   : > { %1201 = sst [smem:[#allocation11_spill]] %s951_s8  ;;  %s32_s12 = sadd.s32 1, %s947_s30 }
   0xd   : > { %p231_p1 = scmp.ne.s32.totalorder %s931_s26, %s927_s25  ;;  %p232_p2 = scmp.eq.s32.totalorder %s731_s9, 5 }
   0xe   : > { %s1224_s11 = smov (%p30_p0, %s29_s11), 0  ;;  %s1226_s12 = smov (!%p30_p0, %s32_s12), %s947_s30 }
   0xf   : > { %1202 = sst [smem:[#allocation12_spill]] %s1224_s11  ;;  %p1045_p3 = por %p232_p2, %p231_p1 }
  0x10   : > { %p237_p4 = scmp.ne.s32.totalorder %s927_s25, %s923_s24  ;;  %p34_p5 = scmp.ge.s32.totalorder %s1226_s12, 2 }
  0x11   : > { %p238_p6 = scmp.eq.s32.totalorder %s732_s10, 5  ;;  %p735_p7 = scmp.ge.s32.totalorder %s951_s8, 1 }
  0x12   : > { %p303_p8 = scmp.lt.s32.totalorder %s951_s8, 7  ;;  %s1228_s12 = smov (%p34_p5, %s1226_s12), 0 }
  0x13   : > { %1204 = sst [smem:[#allocation13_spill]] %s1228_s12  ;;  %p1055_p9 = por %p238_p6, %p237_p4 }
  0x14   : > { %p304_p10 = pnand %p735_p7, %p303_p8  ;;  %s218_s15 = ssub.s32 %s947_s30, %s1228_s12 }
  0x15   : > { %s1205_s14 = scalar_select %p1055_p9, 1, 0 }
  0x16   : > { %s221_s16 = sadd.s32 1, %s931_s26  ;;  %p219_p11 = scmp.eq.s32.totalorder %s218_s15, 0 }
  0x17   : > { %1206 = sst [smem:[#allocation14_spill]] %s1205_s14  ;;  %307 = sbr.rel (%p304_p10) target bundleno = 516 (0x204), region = 48 }
  0x18   : > { %s1063_s17 = scalar_select %p219_p11, %s931_s26, %s221_s16  }
  0x19   : > { %s1186_s18 = sand.u32 (!%p304_p10), 1, %s927_s25   ;;  %p356_p12 = scmp.lt.s32.totalorder (!%p304_p10), %s939_s28, 1 }
  0x1a   : > { %1207 = sst [smem:[#allocation15_spill]] %s1063_s17  ;;  %s1069_s19 = sshll.u32 (!%p304_p10), %s1186_s18, 3 }
  0x1b   : > { %p366_p13 = scmp.lt.s32.totalorder (!%p304_p10), %s935_s27, 2  ;;  %s1208_s1 = sld [smem:[#allocation16_spill]] (!%p304_p10) }
  0x1c   : > { %s357_s20 = scalar_select %p356_p12, %s939_s28, 1 }
  0x1d   : > { %s1074_s21 = scalar_select %p366_p13, %s935_s27, 2 }
  0x1e   : > { %s737_s22 = sshll.u32 %s357_s20, 3  ;;  %s365_s30 = scalar_lea.vmem %s1179_s2, %s357_s20 }
  0x1f   : > { %s359_s12 = scalar_lea.vmem %s1177_s0, %s737_s22  ;;  %s754_s29 = sshll.u32 %s1074_s21, 5 }
  0x20   : > { %s373_s14 = scalar_lea.vmem %s1181_s4, %s1074_s21  ;;  %s1093_s7 = scalar_lea.vmem %s1180_s3, %s754_s29 }
  0x21   : > { %s362_s10 = scalar_lea.vmem %s1208_s1, %s357_s20  ;;  %s755_s23 = sshll.u32 %s1074_s21, 4 }
  0x22   : > { %s1099_s15 = scalar_lea.vmem %s1182_s5, %s755_s23  ;;  %s381_s11 = scalar_lea.vmem %s1183_s6, %s1074_s21 }
  0x23   : > { %s355_s18 = scalar_lea.vmem [#allocation4], %s1069_s19  ;;  %p742_p0 = scmp.ne.s32.totalorder %s935_s27, 0 }
  0x25   : > { %385 = sbr.rel (%p742_p0) target bundleno = 49 (0x31), region = 52 }
  0x2a   : > { %v386_v0 = vld [vmem:[%s362_s10] sm:$0x1]  ;;  %vm393_vm0 = vcmask 261120   ;;  %vm390_vm1 = vcmask 253952  }
  0x2b   : > { %v387_v1 = vld [vmem:[%s365_s30] sm:$0x1] }
  0x2c   : > { %v392_v2 = vld [vmem:[%s359_s12] sm:$0xff]  ;;  %v388_v3 = vmul.f32 %v387_v1, %v386_v0 }
  0x2d   : > { %394 = vst.msk [vmem:[#allocation2] sm:$0xff] %vm393_vm0, %v392_v2 }
  0x2e   : > { %v389_v4 = vmul.f32 0.2, %v388_v3 }
  0x30   : > { %391 = vst.msk [vmem:[#allocation3] sm:$0x1] %vm390_vm1, %v389_v4 }
  0x31 PF: > { %v408_v5 = vld [vmem:[%s1093_s7 + $0x18] sm:$0xff]  ;;  %v953_v6 = vmov 0.0   ;;  %v407_v7 = vld [vmem:[%s1093_s7 + $0x10] sm:$0xff]  ;;  %vm954_vm2 = vmmov 0   ;;  %v406_v11 = vld [vmem:[%s1093_s7 + $0x8] sm:$0xff]  ;;  %vm416_vm3 = vcmask 261120  }
  0x32   : > { %764 = vmatprep.subr.mxu0 %v953_v6  ;;  %772 = vmatprep.mubr.msk.f32.mxu0 %vm954_vm2, %v953_v6  ;;  %v405_v12 = vld [vmem:[%s1093_s7] sm:$0xff]  ;;  %v492_v14 = vld [vmem:[%s1099_s15 + $0x8] sm:$0xff]  ;;  %vm500_vm4 = vcmask 130048   ;;  %p749_p1 = scmp.ne.s32.totalorder %s935_s27, 2 }
  0x33   : > { %765 = vmatpush3.msra.mxu0 %v408_v5  ;;  %775 = vmatprep.subr.mxu1 %v953_v6  ;;  %v491_v15 = vld [vmem:[%s1099_s15] sm:$0xff] }
  0x34   : > { %v396_v8 = vld [vmem:[#allocation2] sm:$0xff]  ;;  %766 = vmatprep.subr.mxu0 %v953_v6  ;;  %779 = vmatprep.mubr.msk.f32.mxu1 %vm954_vm2, %v953_v6 }
  0x35   : > { %v397_v10 = vmul.f32 0.8, %v396_v8  ;;  %767 = vmatpush3.msra.mxu0 %v407_v7  ;;  %776 = vmatpush3.msra.mxu1 %v492_v14  ;;  %v744_v16 = vld [vmem:[%s373_s14] ss:$0 sm:$0xff] }
  0x36   : > { %768 = vmatprep.subr.mxu0 %v953_v6  ;;  %777 = vmatprep.subr.mxu1 %v953_v6  ;;  %v746_v21 = vld [vmem:[%s381_s11] ss:$0 sm:$0xff] }
  0x37   : > { %v743_v9 = vld [vmem:[#allocation3] ss:$0 sm:$0xff]  ;;  %769 = vmatpush3.msra.mxu0 %v406_v11  ;;  %778 = vmatpush3.msra.mxu1 %v491_v15 }
  0x38   : > { %v404_v13 = vadd.f32 %v743_v9, %v397_v10  ;;  %770 = vmatprep.subr.mxu0 %v953_v6 }
  0x39   : > { %771 = vmatpush3.msra.mxu0 %v405_v12 }
  0x3a   : > { %773 = vmatmul.mubr.msk.f32.vlgmr.msra.gmra.mxu0 %vm416_vm3, %v404_v13 }
  0xfa   : > { %v486_v17 = vpop.f32.mrf.mxu0 }
  0xfb   : > { %v487_v18 = vadd.f32 %v744_v16, %v486_v17 }
  0xfc   : > { %v774_v19 = vpop.f32.mrf.mxu0 }
  0xfd   : > { %v490_v20 = vmax.f32 %v487_v18, 0.0 }
  0xff   : > { %780 = vmatmul.mubr.msk.f32.vlgmr.msra.gmra.mxu1 %vm500_vm4, %v490_v20 }
 0x1bf   : > { %v570_v22 = vpop.f32.mrf.mxu1 }
 0x1c0   : > { %v571_v23 = vadd.f32 %v746_v21, %v570_v22 }
 0x1c1   : > { %v781_v24 = vpop.f32.mrf.mxu1 }
 0x1c2   : > { %v748_v25 = vmul.f32 -1.442695, %v571_v23 }
 0x1c4   : > { %855 = vpow2.f32 %v748_v25 }
 0x1d1   : > { %v856_v26 = vpop.eup %855 }
 0x1d2   : > { %v577_v27 = vadd.f32 1.0, %v856_v26 }
 0x1d4   : > { %857 = vrcp.f32 %v577_v27 }
 0x1de   : > { %584 = sbr.rel (%p749_p1) target bundleno = 491 (0x1eb), region = 56 }
 0x1e1   : > { %v858_v28 = vpop.eup %857 }
 0x1e2   : > { %580 = vst.msk [vmem:[#allocation2] sm:$0xff] %vm416_vm3, %v858_v28 }
 0x1e9   : > { %v585_v29 = vld [vmem:[#allocation2] sm:$0xff] }
 0x1ea   : > { %586 = vst.msk [vmem:[%s355_s18] sm:$0xff] %vm416_vm3, %v585_v29 }
 0x1eb PF: > { %s751_s29 = sshll.u32 %s939_s28, 7  ;;  %s1209_s12 = sld [smem:[#allocation17_spill]] }
 0x1ec   : > { %s601_s17 = sshll.u32 %s355_s18, 4  ;;  %s1210_s27 = sand.u32 1, %s927_s25   ;;  %s602_s17 = int_to_ptr.vmem [resolvable:$true] %s601_s17 }
 0x1ed   : > { %s588_s20 = scalar_lea.sflag [#allocation5], %s1210_s27  ;;  %s859_s21 = scalar_lea.vmem %s602_s17, 128 }
 0x1ee   : > { %p860_p2 = scmp.ne.s32.totalorder %s602_s17, %s859_s21  ;;  %s955_s10 = smov [#allocation4]  }
 0x1ef   : > { %s863_s23 = sshll.u32 %s955_s10, 4  ;;  %s864_s23 = int_to_ptr.vmem [resolvable:$false] %s863_s23 }
 0x1f0   : > { %p861_p4 = pnand %p860_p2, %p1045_p3  ;;  %s865_s9 = scalar_lea.vmem %s864_s23, 256 }
 0x1f1   : > { %s599_s14 = scalar_lea.hbm %s1209_s12, %s751_s29  ;;  %p866_p6 = scmp.lt.s32.totalorder %s602_s17, %s864_s23 }
 0x1f2   : > { %p862_p5 = pneg %p861_p4  ;;  %p867_p7 = scmp.lt.s32.totalorder %s865_s9, %s859_s21 }
 0x1f4   : > { %p868_p8 = por %p867_p7, %p866_p6 }
 0x1f6   : > { %p869_p10 = pnand %p868_p8, %p862_p5 }
 0x1f8   : > { %872 = shalt.err (!%p869_p10)
}
 0x1f9   : > { %s873_s28 = scalar_lea.hbm %s599_s14, 128  ;;  %s877_s22 = scalar_lea.hbm %s1209_s12, 256 }
 0x1fa   : > { %p874_p11 = scmp.ne.s32.totalorder %s599_s14, %s873_s28  ;;  %p878_p0 = scmp.lt.s32.totalorder %s599_s14, %s1209_s12 }
 0x1fb   : > { %p879_p1 = scmp.lt.s32.totalorder %s877_s22, %s873_s28 }
 0x1fc   : > { %p875_p12 = pnand %p874_p11, %p1045_p3 }
 0x1fd   : > { %p880_p2 = por %p879_p1, %p878_p0 }
 0x1fe   : > { %p876_p13 = pneg %p875_p12 }
 0x200   : > { %p881_p4 = pnand %p880_p2, %p876_p13 }
 0x202   : > { %884 = shalt.err (!%p881_p4)
}
 0x203   : > { %782 = dma.vmem_to_hbm [thread:$0]  (%p1045_p3), %s602_s17, 128, %s599_s14, %s588_s20  }
 0x204 PF: > { %s1211_s18 = sld [smem:[#allocation11_spill]] }
 0x205   : > { %s1212_s1 = sld [smem:[#allocation7_spill]] }
 0x20a   : > { %p788_p5 = scmp.ge.s32.totalorder %s1211_s18, 2 }
 0x20b   : > { %s613_s7 = sand.u32 1, %s1212_s1  }
 0x20c   : > { %p785_p6 = pnand %p788_p5, %p1055_p9  ;;  %s614_s26 = scalar_lea.sflag [#allocation5], %s613_s7 }
 0x20e   : > { %p786_p7 = pneg %p785_p6 }
 0x210   : > { %918 = dma.done.wait (%p786_p7), %s614_s26, 128  }
 0x211   : > { %920 = vsyncadd (%p786_p7), %s614_s26, 4294967168  ;;  %s20_s8 = sadd.s32 1, %s1211_s18   ;;  %s1214_s29 = sld [smem:[#allocation8_spill]] }
 0x212   : > { %p17_p8 = scmp.ge.s32.totalorder %s20_s8, 8   ;;  %s1215_s26 = sld [smem:[#allocation15_spill]] }
 0x213   : > { %s1216_s27 = sld [smem:[#allocation9_spill]]  ;;  %s1220_s24 = smov %s927_s25 }
 0x214   : > { %s1217_s28 = sld [smem:[#allocation10_spill]] }
 0x215   : > { %s1218_s13 = sld [smem:[#allocation12_spill]] }
 0x216   : > { %s1219_s30 = sld [smem:[#allocation13_spill]] }
 0x217   : > { %s1221_s25 = smov %s1214_s29  ;;  %19 = sbr.rel (!%p17_p8) target bundleno = 8 (0x8), region = 109 }
 0x21b   : > { %s1222_s29 = smov %s1218_s13 }
 0x21c   :  { %619 = vsyncpa [#allocation5], 1 }
 0x21d   :  { %621 = vsyncpa [#allocation5 + $0x1], 1 }

</bundles_post_ra>
